<compile_context>
chip_gen: v7x
topology: tpu7x:2x2x1
jax: 0.10.0
libtpu: 0.0.40
codegen_flags: <defaults>
</compile_context>

<pallas_src>
import jax
import jax.numpy as jnp
from jax.experimental import pallas as pl
from jax.experimental.pallas import tpu as pltpu

N_OPS = 3          # number of candidate ops on this mixed edge
KH = KW = 3        # candidate op kernel size


def _round_up(x, m):
    return ((x + m - 1) // m) * m


def mixed_edge_kernel(w_ref, p_ref, o_ref):
    # w_ref : VMEM (N_OPS*C_out, K_pad) bf16  gate-folded weights (+ bias column), resident
    # p_ref : VMEM (K_pad, TM)          bf16  transposed im2col patches (+ ones row), streamed
    # o_ref : VMEM (C_out, TM)          f32   mixed output tile (lane-dense)
    fused = jnp.dot(w_ref[...], p_ref[...],
                    preferred_element_type=jnp.float32)   # (N_OPS*C_out, TM), f32 acc
    fused = jnp.maximum(fused, 0.0)                       # per-candidate ReLU
    # Gates (>= 0) are already folded into w_ref, so the mixed output is just
    # the sum of the per-op chunks.  C_out = 8 -> each chunk is exactly one
    # sublane tile: these are cheap VPU adds with no lane movement.
    c_out = o_ref.shape[0]
    n_chunks = fused.shape[0] // c_out
    acc = fused[0:c_out, :]
    for k in range(1, n_chunks):                          # tiny static unroll
        acc = acc + fused[k * c_out:(k + 1) * c_out, :]
    o_ref[...] = acc.astype(o_ref.dtype)


def _im2col_t_3x3(x_nchw):
    """Transposed im2col: (K, M) with K = (kh*KW + kw)*C_in + c_in, M = n*H*W + y*W + x."""
    n, c, h, w = x_nchw.shape
    xp = jnp.pad(x_nchw, ((0, 0), (0, 0), (1, 1), (1, 1)))
    taps = [xp[:, :, dy:dy + h, dx:dx + w] for dy in range(KH) for dx in range(KW)]
    pat = jnp.stack(taps, axis=0)                 # (9, N, C, H, W)
    pat = jnp.transpose(pat, (0, 2, 1, 3, 4))     # (9, C, N, H, W)
    return pat.reshape(KH * KW * c, n * h * w)    # (K, M)


def mixed_edge_forward(x_nchw, weights_oihw, biases, ap_path_wb, *, tm=512):
    """x: (N, C_in, H, W) f32; weights: (N_OPS, C_out, C_in, 3, 3); biases: (N_OPS, C_out);
    ap_path_wb: (N_OPS,) nonnegative gates (softmax / one-hot)."""
    n, c_in, h, w = x_nchw.shape
    n_ops, c_out = weights_oihw.shape[0], weights_oihw.shape[1]
    assert n_ops == N_OPS

    m = n * h * w
    k_real = KH * KW * c_in
    k1 = k_real + 1                      # + constant-1 row that carries the bias
    k_pad = _round_up(k1, 16)            # bf16 sublane packing friendly

    # --- streamed operand: transposed, bias-row-augmented, bf16 patches -------------
    patches_t = _im2col_t_3x3(x_nchw.astype(jnp.float32))              # (K, M)
    pt = jnp.concatenate(
        [patches_t,
         jnp.ones((1, m), jnp.float32),                                # bias row
         jnp.zeros((k_pad - k1, m), jnp.float32)], axis=0)             # K padding
    # Row tile: multiple of 128 (lane-dense output), amortizes grid overhead.
    tm = max(128, min(tm, _round_up(m, 128)))
    m_pad = _round_up(m, tm)
    pt = jnp.pad(pt, ((0, 0), (0, m_pad - m))).astype(jnp.bfloat16)    # (K_pad, M_pad)

    # --- resident operand: gate-folded, bias-augmented, bf16 weights ----------------
    # Gates come from softmax (>= 0), so g*relu(conv(x)+b) == relu(g*conv(x)+g*b)
    # and the gate can be folded into weights and biases.
    g = ap_path_wb.astype(jnp.float32)
    wt = jnp.transpose(weights_oihw.astype(jnp.float32), (0, 1, 3, 4, 2))  # (op, co, kh, kw, ci)
    wt = wt.reshape(n_ops, c_out, k_real) * g[:, None, None]
    bt = (biases.astype(jnp.float32) * g[:, None]).reshape(n_ops, c_out, 1)
    w_full = jnp.concatenate(
        [wt, bt, jnp.zeros((n_ops, c_out, k_pad - k1), jnp.float32)], axis=2)
    w_full = w_full.reshape(n_ops * c_out, k_pad).astype(jnp.bfloat16)     # (N_OPS*C_out, K_pad)

    out_t = pl.pallas_call(
        mixed_edge_kernel,
        out_shape=jax.ShapeDtypeStruct((c_out, m_pad), jnp.float32),
        grid_spec=pltpu.PrefetchScalarGridSpec(
            num_scalar_prefetch=0,
            grid=(m_pad // tm,),
            in_specs=[
                pl.BlockSpec((n_ops * c_out, k_pad), lambda i: (0, 0)),  # resident weights
                pl.BlockSpec((k_pad, tm), lambda i: (0, i)),             # streamed patches
            ],
            out_specs=pl.BlockSpec((c_out, tm), lambda i: (0, i)),       # lane-dense output
        ),
        compiler_params=pltpu.CompilerParams(
            dimension_semantics=("parallel",),
            vmem_limit_bytes=48 * 1024 * 1024),
        cost_estimate=pl.CostEstimate(
            flops=2 * m * k_real * n_ops * c_out,
            transcendentals=0,
            bytes_accessed=pt.size * 2 + w_full.size * 2 + c_out * m * 4),
    )(w_full, pt)

    out_t = out_t[:, :m]                                   # (C_out, M), drop M padding
    out = out_t.reshape(c_out, n, h, w)
    return jnp.transpose(out, (1, 0, 2, 3))                # NCHW


def _reference(x_nchw, weights_oihw, biases, ap_path_wb):
    """Plain-JAX f32 reference of the same MixedEdge 'full' forward."""
    out = 0.0
    for k in range(N_OPS):
        o = jax.lax.conv_general_dilated(
            x_nchw, weights_oihw[k], window_strides=(1, 1), padding="SAME",
            dimension_numbers=("NCHW", "OIHW", "NCHW"))
        o = o + biases[k][None, :, None, None]
        o = jnp.maximum(o, 0.0)
        out = out + ap_path_wb[k] * o
    return out


if __name__ == "__main__":
    key = jax.random.PRNGKey(0)
    k_x, k_w, k_b, k_a = jax.random.split(key, 4)

    N, C_IN, H, W, C_OUT = 2, 4, 16, 16, 8
    x = jax.random.normal(k_x, (N, C_IN, H, W), jnp.float32)

    # Deterministic synthetic parameters for the candidate ops and arch params
    weights = 0.1 * jax.random.normal(k_w, (N_OPS, C_OUT, C_IN, KH, KW), jnp.float32)
    biases = 0.1 * jax.random.normal(k_b, (N_OPS, C_OUT), jnp.float32)
    ap_path_alpha = jax.random.normal(k_a, (N_OPS,), jnp.float32)

    # MODE='full': gates AP_path_wb weight every candidate path.
    # (With a one-hot gate this reduces exactly to the default MODE=None
    #  forward, i.e. output = active_op(x).)  Gates are softmax -> nonnegative,
    # which the gate-into-weights fold in the wrapper relies on.
    ap_path_wb = jax.nn.softmax(ap_path_alpha)

    out = mixed_edge_forward(x, weights, biases, ap_path_wb)
    out = jax.block_until_ready(out)

    ref = _reference(x, weights, biases, ap_path_wb)
    assert out.shape == (N, C_OUT, H, W)
    # Tolerance loosened vs f32-only version: MXU inputs are bf16 (f32 accumulation).
    assert jnp.allclose(out, ref, atol=2e-2, rtol=2e-2), "mismatch vs reference"

    print("KERNEL_OK")
</pallas_src>

<mosaic_0001>
module attributes {stable_mosaic.version = 11 : i64} {
  func.func @mixed_edge_kernel(%arg0: i32, %arg1: memref<24x48xbf16, #tpu.memory_space<vmem>>, %arg2: memref<48x512xbf16, #tpu.memory_space<vmem>>, %arg3: memref<8x512xf32, #tpu.memory_space<vmem>>) attributes {dimension_semantics = [#tpu.dimension_semantics<parallel>], iteration_bounds = array<i64: 1>, scalar_prefetch = 0 : i64, scratch_operands = 0 : i64, tpu.core_type = #tpu.core_type<tc>, window_params = [{pipeline_mode = #tpu.pipeline_mode<synchronous>, transform_indices = @transform_0, window_bounds = array<i64: 24, 48>}, {transform_indices = @transform_1, window_bounds = array<i64: 48, 512>}, {transform_indices = @transform_2, window_bounds = array<i64: 8, 512>}]} {
    %c0 = arith.constant 0 : index
    %c0_0 = arith.constant 0 : index
    %0 = vector.load %arg1[%c0, %c0_0] : memref<24x48xbf16, #tpu.memory_space<vmem>>, vector<24x48xbf16>
    %c0_1 = arith.constant 0 : index
    %c0_2 = arith.constant 0 : index
    %1 = vector.load %arg2[%c0_1, %c0_2] : memref<48x512xbf16, #tpu.memory_space<vmem>>, vector<48x512xbf16>
    %cst = arith.constant dense<0.000000e+00> : vector<24x512xf32>
    %2 = tpu.matmul %0, %1, %cst {dimension_numbers = #tpu.dot_dimension_numbers<[1], [0], [0], [1], [0, 0, 1, 1], [], []>} : vector<24x48xbf16>, vector<48x512xbf16>, vector<24x512xf32> -> vector<24x512xf32>
    %cst_3 = arith.constant 0.000000e+00 : f32
    %3 = vector.broadcast %cst_3 : f32 to vector<24x512xf32>
    %4 = arith.maximumf %2, %3 : vector<24x512xf32>
    %5 = vector.extract_strided_slice %4 {offsets = [0, 0], sizes = [8, 512], strides = [1, 1]} : vector<24x512xf32> to vector<8x512xf32>
    %6 = vector.extract_strided_slice %4 {offsets = [8, 0], sizes = [8, 512], strides = [1, 1]} : vector<24x512xf32> to vector<8x512xf32>
    %7 = arith.addf %5, %6 : vector<8x512xf32>
    %8 = vector.extract_strided_slice %4 {offsets = [16, 0], sizes = [8, 512], strides = [1, 1]} : vector<24x512xf32> to vector<8x512xf32>
    %9 = arith.addf %7, %8 : vector<8x512xf32>
    %c0_4 = arith.constant 0 : index
    %c0_5 = arith.constant 0 : index
    %10 = vector.load %arg3[%c0_4, %c0_5] : memref<8x512xf32, #tpu.memory_space<vmem>>, vector<8x512xf32>
    tpu.vector_store %arg3[%c0_4, %c0_5], %9 {strides = array<i32>} : memref<8x512xf32, #tpu.memory_space<vmem>>, vector<8x512xf32>,
    return
  }
  func.func @transform_0(%arg0: i32) -> (i32, i32) {
    %c0_i32 = arith.constant 0 : i32
    %c0_i32_0 = arith.constant 0 : i32
    %c0_i32_1 = arith.constant 0 : i32
    return %c0_i32, %c0_i32_0 : i32, i32
  }
  func.func @transform_1(%arg0: i32) -> (i32, i32) {
    %c0_i32 = arith.constant 0 : i32
    %c0_i32_0 = arith.constant 0 : i32
    return %c0_i32, %arg0 : i32, i32
  }
  func.func @transform_2(%arg0: i32) -> (i32, i32) {
    %c0_i32 = arith.constant 0 : i32
    %c0_i32_0 = arith.constant 0 : i32
    return %c0_i32, %arg0 : i32, i32
  }
}

</mosaic_0001>

<bundles_post_ra>
// kernel: tpu_custom_call.1
= control target key start
LH: loop header
LB: loop body
LE: loop exit
PB: predicated region body
PF: predicated region fallthrough
CT: control target
= control target key end

     0   :  { %7 = vsyncpa [#allocation3], 0  ;;  %s450_s0 = inlined_call_operand.hbm [shape: bf16[24,48], index: 0, kind: input, shape index: {}]   ;;  %s451_s1 = inlined_call_operand.hbm [shape: bf16[48,512], index: 1, kind: input, shape index: {}]   ;;  %s452_s2 = inlined_call_operand.hbm [shape: f32[8,512], index: 2, kind: output, shape index: {}]  }
   0x1   :  { %8 = vsyncpa [#allocation6], 0 }
   0x2   :  { %9 = vsyncpa [#allocation4], 0  ;;  %s391_s9 = smov [#allocation2]   ;;  %s319_s13 = scalar_lea.hbm %s450_s0, 192 }
   0x3   :  { %s15_s10 = sshll.u32 %s391_s9, 4  ;;  %p320_p0 = scmp.ne.s32.totalorder %s450_s0, %s319_s13  ;;  %s16_s10 = int_to_ptr.vmem [resolvable:$true] %s15_s10 }
   0x4   :  { %p323_p1 = scmp.lt.u32.totalorder %s319_s13, %s450_s0 }
   0x6   :  { %p325_p2 = pnand %p323_p1, %p320_p0 }
   0x8   :  { %328 = shalt.err (!%p325_p2)
}
   0x9   :  { %s329_s18 = scalar_lea.vmem %s16_s10, 192  ;;  %p334_p4 = scmp.lt.s32.totalorder %s16_s10, %s16_s10 }
   0xa   :  { %p330_p3 = scmp.ne.s32.totalorder %s16_s10, %s329_s18  ;;  %p335_p5 = scmp.lt.s32.totalorder %s329_s18, %s329_s18 }
   0xc   :  { %p336_p6 = por %p335_p5, %p334_p4 }
   0xe   :  { %p337_p7 = pnand %p336_p6, %p330_p3 }
  0x10   :  { %340 = shalt.err (!%p337_p7)
}
  0x11   :  { %s392_s19 = smov 64   ;;  %s393_s20 = smov 4  }
  0x12   :  { %21 = dma.hbm_to_vmem [thread:$0]  %s450_s0, 192, %s16_s10, [#allocation3], %s392_s19, %s392_s19, %s393_s20  }
  0x13   :  { %s394_s23 = smov [#allocation5]   ;;  %s341_s27 = scalar_lea.hbm %s451_s1, 1536 }
  0x14   :  { %s27_s24 = sshll.u32 %s394_s23, 4  ;;  %p342_p8 = scmp.ne.s32.totalorder %s451_s1, %s341_s27  ;;  %s28_s24 = int_to_ptr.vmem [resolvable:$true] %s27_s24 }
  0x15   :  { %p345_p9 = scmp.lt.u32.totalorder %s341_s27, %s451_s1 }
  0x17   :  { %p347_p10 = pnand %p345_p9, %p342_p8 }
  0x19   :  { %350 = shalt.err (!%p347_p10)
}
  0x1a   :  { %s351_s4 = scalar_lea.vmem %s28_s24, 1536  ;;  %p356_p12 = scmp.lt.s32.totalorder %s28_s24, %s28_s24 }
  0x1b   :  { %p352_p11 = scmp.ne.s32.totalorder %s28_s24, %s351_s4  ;;  %p357_p13 = scmp.lt.s32.totalorder %s351_s4, %s351_s4 }
  0x1d   :  { %p358_p0 = por %p357_p13, %p356_p12 }
  0x1f   :  { %p359_p1 = pnand %p358_p0, %p352_p11 }
  0x21   :  { %362 = shalt.err (!%p359_p1)
}
  0x22   :  { %s395_s0 = smov 256   ;;  %s396_s5 = smov 16  }
  0x23   :  { %33 = dma.hbm_to_vmem [thread:$0]  %s451_s1, 1536, %s28_s24, [#allocation6], %s395_s0, %s395_s0, %s396_s5  }
  0x24   :  { %385 = dma.done.wait [#allocation3], 192  }
  0x25   :  { %386 = vsyncadd [#allocation3], 4294967104 }
  0x26   :  { %387 = dma.done.wait [#allocation6], 1536  }
  0x27   :  { %388 = vsyncadd [#allocation6], 4294965760  ;;  %v397_v0 = vmov 0   ;;  %v299_v1 = vld [vmem:[#allocation5 + $0x4] ss:$16 sps:$4 sm:$0xff]   ;;  %vm124_vm0 = vcmask 392192  }
  0x28   :  { %163 = vmatprep.mubr.bf16.mxu0 %v397_v0  ;;  %214 = vmatprep.mubr.bf16.mxu1 %v397_v0  ;;  %v301_v2 = vld [vmem:[#allocation5 + $0xc] ss:$16 sps:$4 sm:$0xff]   ;;  %v303_v3 = vld [vmem:[#allocation5] ss:$16 sps:$4 sm:$0xff]   ;;  %v304_v4 = vld [vmem:[#allocation5 + $0x8] ss:$16 sps:$4 sm:$0xff]  }
  0x29   :  { %131 = vmatprep.subr.bf16.mxu0 %v299_v1  ;;  %182 = vmatprep.subr.bf16.mxu1 %v301_v2  ;;  %v305_v5 = vld [vmem:[#allocation5 + $0x24] ss:$16 sps:$4 sm:$0xff]   ;;  %v307_v6 = vld [vmem:[#allocation5 + $0x2c] ss:$16 sps:$4 sm:$0xff]   ;;  %v309_v7 = vld [vmem:[#allocation5 + $0x20] ss:$16 sps:$4 sm:$0xff]  }
  0x2a   :  { %132 = vmatpush1.bf16.msra.mxu0 %v303_v3  ;;  %183 = vmatpush1.bf16.msra.mxu1 %v304_v4  ;;  %v310_v8 = vld [vmem:[#allocation5 + $0x28] ss:$16 sps:$4 sm:$0xff]   ;;  %v311_v9 = vld [vmem:[#allocation5 + $0x44] ss:$16 sps:$4 sm:$0xff]   ;;  %v313_v10 = vld [vmem:[#allocation5 + $0x4c] ss:$16 sps:$4 sm:$0xff]  }
  0x2b   :  { %133 = vmatprep.subr.bf16.mxu0 %v305_v5  ;;  %184 = vmatprep.subr.bf16.mxu1 %v307_v6  ;;  %v315_v11 = vld [vmem:[#allocation5 + $0x40] ss:$16 sps:$4 sm:$0xff]   ;;  %v316_v12 = vld [vmem:[#allocation5 + $0x48] ss:$16 sps:$4 sm:$0xff]   ;;  %v318_v14 = vld [vmem:[#allocation2 + $0x8] ss:$0 sps:$4 sm:$0xff]  }
  0x2c   :  { %v317_v13 = vld [vmem:[#allocation2] sm:$0xff]   ;;  %s398_s1 = smov [#allocation7]  }
  0x2d   :  { %s263_s8 = sshll.u32 %s398_s1, 4  ;;  %s264_s8 = int_to_ptr.vmem [resolvable:$true] %s263_s8 }
  0x2e   :  { %134 = vmatpush1.bf16.msra.mxu0 %v309_v7  ;;  %185 = vmatpush1.bf16.msra.mxu1 %v310_v8  ;;  %s363_s9 = scalar_lea.vmem %s264_s8, 512  ;;  %p368_p3 = scmp.lt.s32.totalorder %s264_s8, %s264_s8 }
  0x2f   :  { %135 = vmatprep.subr.bf16.mxu0 %v311_v9  ;;  %186 = vmatprep.subr.bf16.mxu1 %v313_v10  ;;  %p364_p2 = scmp.ne.s32.totalorder %s264_s8, %s363_s9  ;;  %p369_p4 = scmp.lt.s32.totalorder %s363_s9, %s363_s9 }
  0x31   :  { %p370_p5 = por %p369_p4, %p368_p3 }
  0x32   :  { %136 = vmatpush1.bf16.msra.mxu0 %v315_v11  ;;  %187 = vmatpush1.bf16.msra.mxu1 %v316_v12 }
  0x33   :  { %p371_p6 = pnand %p370_p5, %p364_p2 }
  0x35   :  { %287 = vmatmul.mubr.msk.bf16.vlgmr.msra.gmra.mrb[0].mxu0 %vm124_vm0, %v317_v13  ;;  %289 = vmatmul.mubr.msk.bf16.vlgmr.msra.gmra.mrb[0].mxu1 %vm124_vm0, %v317_v13 }
  0x36   :  { %173 = vmatprep.mubr.bf16.mxu0 %v397_v0  ;;  %224 = vmatprep.mubr.bf16.mxu1 %v397_v0 }
  0x3d   :  { %288 = vmatmul.mubr.msk.bf16.gmra.mrb[4].mxu0 %vm124_vm0, %v318_v14  ;;  %290 = vmatmul.mubr.msk.bf16.gmra.mrb[4].mxu1 %vm124_vm0, %v318_v14 }
 0x108   :  { %v165_v15 = vpop.f32.mrb[0].mxu0  ;;  %v216_v16 = vpop.f32.mrb[0].mxu1 }
 0x109   :  { %v167_v17 = vpop.f32.mrb[1].mxu0  ;;  %v218_v18 = vpop.f32.mrb[1].mxu1  ;;  %v233_v21 = vmax.f32 %v165_v15, 0.0  ;;  %v235_v22 = vmax.f32 %v216_v16, 0.0 }
 0x10a   :  { %v169_v19 = vpop.f32.mrb[2].mxu0  ;;  %v220_v20 = vpop.f32.mrb[2].mxu1  ;;  %v234_v27 = vmax.f32 %v167_v17, 0.0  ;;  %v236_v28 = vmax.f32 %v218_v18, 0.0 }
 0x10b   :  { %v237_v23 = vmax.f32 %v169_v19, 0.0  ;;  %v239_v24 = vmax.f32 %v220_v20, 0.0  ;;  %v171_v25 = vpop.f32.mrb[3].mxu0  ;;  %v222_v26 = vpop.f32.mrb[3].mxu1 }
 0x10c   :  { %v238_v29 = vmax.f32 %v171_v25, 0.0  ;;  %v240_v30 = vmax.f32 %v222_v26, 0.0 }
 0x10d   :  { %v245_v31 = vadd.f32 %v237_v23, %v233_v21  ;;  %v247_v32 = vadd.f32 %v239_v24, %v235_v22 }
 0x10e   :  { %v246_v33 = vadd.f32 %v238_v29, %v234_v27  ;;  %v248_v34 = vadd.f32 %v240_v30, %v236_v28 }
 0x110   :  { %v175_v35 = vpop.f32.mrb[4].mxu0  ;;  %v226_v36 = vpop.f32.mrb[4].mxu1 }
 0x111   :  { %v241_v37 = vmax.f32 %v175_v35, 0.0  ;;  %v243_v38 = vmax.f32 %v226_v36, 0.0  ;;  %v177_v39 = vpop.f32.mrb[5].mxu0  ;;  %v228_v40 = vpop.f32.mrb[5].mxu1 }
 0x112   :  { %v242_v41 = vmax.f32 %v177_v39, 0.0  ;;  %v244_v42 = vmax.f32 %v228_v40, 0.0  ;;  %v179_v43 = vpop.f32.mrb[6].mxu0  ;;  %v230_v44 = vpop.f32.mrb[6].mxu1 }
 0x113   :  { %v249_v45 = vadd.f32 %v245_v31, %v241_v37  ;;  %v251_v46 = vadd.f32 %v247_v32, %v243_v38  ;;  %v180_v47 = vpop.f32.mrb[7].mxu0  ;;  %v231_v48 = vpop.f32.mrb[7].mxu1 }
 0x114   :  { %v250_v49 = vadd.f32 %v246_v33, %v242_v41  ;;  %v252_v50 = vadd.f32 %v248_v34, %v244_v42 }
 0x115   :  { %253 = vst [vmem:[#allocation7] sm:$0xff] %v249_v45  ;;  %255 = vst [vmem:[#allocation7 + $0x10] sm:$0xff] %v251_v46 }
 0x116   :  { %254 = vst [vmem:[#allocation7 + $0x8] sm:$0xff] %v250_v49  ;;  %256 = vst [vmem:[#allocation7 + $0x18] sm:$0xff] %v252_v50 }
 0x117   :  { %374 = shalt.err (!%p371_p6)
}
 0x118   :  { %s375_s12 = scalar_lea.hbm %s452_s2, 512 }
 0x119   :  { %p376_p7 = scmp.ne.s32.totalorder %s452_s2, %s375_s12  ;;  %p379_p8 = scmp.lt.u32.totalorder %s375_s12, %s452_s2 }
 0x11b   :  { %p381_p9 = pnand %p379_p8, %p376_p7 }
 0x11d   :  { %384 = shalt.err (!%p381_p9)
}
 0x11e   :  { %266 = dma.vmem_to_hbm [thread:$0]  %s264_s8, 512, %s452_s2, [#allocation4]  }
 0x11f   :  { %389 = dma.done.wait [#allocation4], 512  }
 0x120   :  { %390 = vsyncadd [#allocation4], 4294966784 }
 0x121   :  { %270 = vsyncpa [#allocation3], 1 }
 0x122   :  { %271 = vsyncpa [#allocation6], 1 }
 0x123   :  { %272 = vsyncpa [#allocation4], 1 }

</bundles_post_ra>
